<compile_context>
chip_gen: v6e
topology: v6e:2x2x1
jax: 0.10.0
libtpu: 0.0.40
codegen_flags: <defaults>
</compile_context>

<pallas_src>
import functools

import jax
import jax.numpy as jnp
from jax.experimental import pallas as pl
from jax.experimental.pallas import tpu as pltpu


def _tent_kernel(xT_ref, w_ref, b_ref,            # inputs
                 y_ref, w_out_ref, b_out_ref,     # outputs
                 w_sc, b_sc, dw_sc, db_sc,        # VMEM scratch (grid-persistent)
                 *, lr_eff):
    """Grid = (steps, n_tiles): one adaptation step per `s`, reduced over `n`."""
    s = pl.program_id(0)
    n = pl.program_id(1)
    last_step = s == pl.num_programs(0) - 1
    last_tile = n == pl.num_programs(1) - 1

    # Load the initial parameters into the resident VMEM copies once.
    @pl.when(jnp.logical_and(s == 0, n == 0))
    def _():
        w_sc[...] = w_ref[...]
        b_sc[...] = b_ref[...]

    # Zero the gradient accumulators at the start of every adaptation step.
    @pl.when(n == 0)
    def _():
        dw_sc[...] = jnp.zeros_like(dw_sc)
        db_sc[...] = jnp.zeros_like(db_sc)

    xT = xT_ref[...]                 # (C, TILE_N)  -- N on lanes (lane dense)
    w = w_sc[...]                    # (K, C)
    b = b_sc[...]                    # (K, 1)

    # forward: y^T = W^T x^T + b   (1x1 conv == per-pixel matmul, MXU)
    # NOTE: keep f32 operands to preserve reference forward semantics; on
    # v6e/v7x casting xT/w to bf16 (with f32 accumulation) would halve x DMA.
    yT = jnp.dot(w, xT, preferred_element_type=jnp.float32) + b   # (K, TILE_N)

    # loss = mean(sigmoid(y) * y)  ->  dL/dy = (s + y*s*(1-s)) / (N*K)
    # The 1/(N*K) factor is folded into lr_eff (gradients are linear in g).
    sg = jax.nn.sigmoid(yT)
    gT = sg + yT * sg * (1.0 - sg)                                 # (K, TILE_N)

    # backward: accumulate raw gradients over the N tiles of this step.
    #   dW^T[k, c] = sum_n g^T[k, n] * x^T[c, n]   ("NT" matmul, no transpose)
    dw_sc[...] += jax.lax.dot_general(
        gT, xT, (((1,), (1,)), ((), ())),
        preferred_element_type=jnp.float32)                        # (K, C)
    db_sc[...] += jnp.sum(gT, axis=1, keepdims=True)               # (K, 1)

    # Outputs of the LAST step (computed with the pre-update params, matching
    # forward_and_adapt which returns model(x) before optimizer.step()).
    @pl.when(last_step)
    def _():
        y_ref[...] = yT

    # optimizer.step(): plain SGD, applied after the full-N reduction.
    @pl.when(last_tile)
    def _():
        w_sc[...] = w_sc[...] - lr_eff * dw_sc[...]
        b_sc[...] = b_sc[...] - lr_eff * db_sc[...]

    @pl.when(jnp.logical_and(last_step, last_tile))
    def _():
        w_out_ref[...] = w_sc[...]
        b_out_ref[...] = b_sc[...]


def _pick_tile_n(n, cap=2048):
    """Largest multiple-of-128 tile <= cap that divides n (or n itself)."""
    if n % 128 != 0:
        return n                     # single full-width tile (full-dim block OK)
    t = min(n, cap)
    while n % t:
        t -= 128
    return t


def tent_adapt(xT, wT, bT, *, steps, lr):
    """All `steps` forward_and_adapt iterations fused into one pallas_call."""
    C, N = xT.shape
    K = wT.shape[0]
    tile_n = _pick_tile_n(N)
    n_tiles = max(N // tile_n, 1)
    lr_eff = lr / float(N * K)       # fold the loss `.mean()` 1/(N*K) into lr

    kernel = functools.partial(_tent_kernel, lr_eff=lr_eff)

    return pl.pallas_call(
        kernel,
        out_shape=(
            jax.ShapeDtypeStruct((K, N), jnp.float32),   # y^T of the last step
            jax.ShapeDtypeStruct((K, C), jnp.float32),   # adapted W^T
            jax.ShapeDtypeStruct((K, 1), jnp.float32),   # adapted b^T
        ),
        grid_spec=pltpu.PrefetchScalarGridSpec(
            num_scalar_prefetch=0,
            grid=(steps, n_tiles),
            in_specs=[
                pl.BlockSpec((C, tile_n), lambda s, n: (0, n)),   # x^T tile
                pl.BlockSpec((K, C), lambda s, n: (0, 0)),        # W^T (resident)
                pl.BlockSpec((K, 1), lambda s, n: (0, 0)),        # b^T (resident)
            ],
            out_specs=(
                pl.BlockSpec((K, tile_n), lambda s, n: (0, n)),   # y^T tile
                pl.BlockSpec((K, C), lambda s, n: (0, 0)),
                pl.BlockSpec((K, 1), lambda s, n: (0, 0)),
            ),
            scratch_shapes=[
                pltpu.VMEM((K, C), jnp.float32),   # resident W^T
                pltpu.VMEM((K, 1), jnp.float32),   # resident b^T
                pltpu.VMEM((K, C), jnp.float32),   # dW^T accumulator
                pltpu.VMEM((K, 1), jnp.float32),   # db^T accumulator
            ],
        ),
        compiler_params=pltpu.CompilerParams(
            # `steps` must run sequentially; the N axis is a reduction feeding
            # the parameter update, so it is sequential as well.
            dimension_semantics=("arbitrary", "arbitrary"),
            vmem_limit_bytes=32 * 1024 * 1024,   # fits all gens incl. v7x 64 MiB
        ),
    )(xT, wT, bT)


def tent_forward(x_nchw, w, b, *, steps=10, lr=1e-3):
    """Tent.forward with entropy=True: `steps` fused forward_and_adapt steps.

    Returns the outputs of the last step (NCHW) plus the adapted parameters.
    """
    B, C, H, W = x_nchw.shape
    K = w.shape[1]
    N = B * H * W

    # NCHW -> transposed 2-D layout x^T = [C, B*H*W] (N on the lane axis).
    xT = jnp.transpose(x_nchw, (1, 0, 2, 3)).reshape(C, N)
    wT = jnp.transpose(w)                 # (K, C)
    bT = jnp.transpose(b)                 # (K, 1)

    yT, wT_new, bT_new = tent_adapt(xT, wT, bT, steps=steps, lr=lr)

    # y^T [K, B*H*W] -> NCHW [B, K, H, W] (PyTorch Conv2d output layout).
    outputs = jnp.transpose(yT.reshape(K, B, H, W), (1, 0, 2, 3))
    return outputs, jnp.transpose(wT_new), jnp.transpose(bT_new)


def _reference(x_nchw, w, b, *, steps, lr):
    """Pure-JAX reference of the same Tent adaptation loop."""
    B, C, H, W = x_nchw.shape
    K = w.shape[1]
    x2d = jnp.transpose(x_nchw, (0, 2, 3, 1)).reshape(-1, C)
    n_elems = x2d.shape[0] * K
    y = None
    for _ in range(steps):
        y = jnp.dot(x2d, w, precision=jax.lax.Precision.HIGHEST) + b
        s = jax.nn.sigmoid(y)
        g = (s + y * s * (1.0 - s)) / n_elems
        w = w - lr * jnp.dot(x2d.T, g, precision=jax.lax.Precision.HIGHEST)
        b = b - lr * jnp.sum(g, axis=0, keepdims=True)
    out = jnp.transpose(y.reshape(B, H, W, K), (0, 3, 1, 2))
    return out, w, b


if __name__ == "__main__":
    key = jax.random.PRNGKey(0)
    kx, kw, kb = jax.random.split(key, 3)

    B, C, H, W, K = 2, 4, 16, 16, 8
    x = jax.random.normal(kx, (B, C, H, W), dtype=jnp.float32)      # NCHW input
    w0 = jax.random.normal(kw, (C, K), dtype=jnp.float32) * 0.1     # 1x1 conv weight
    b0 = jax.random.normal(kb, (1, K), dtype=jnp.float32) * 0.1     # conv bias

    outputs, w_adapted, b_adapted = tent_forward(x, w0, b0, steps=10, lr=1e-3)
    jax.block_until_ready((outputs, w_adapted, b_adapted))

    assert outputs.shape == (B, K, H, W)
    assert w_adapted.shape == (C, K) and b_adapted.shape == (1, K)
    assert bool(jnp.all(jnp.isfinite(outputs)))

    # Sanity check vs a pure-JAX reference (loose tol for MXU rounding).
    ref_out, ref_w, ref_b = _reference(x, w0, b0, steps=10, lr=1e-3)
    assert bool(jnp.allclose(outputs, ref_out, rtol=1e-2, atol=1e-2))
    assert bool(jnp.allclose(w_adapted, ref_w, rtol=1e-2, atol=1e-2))
    assert bool(jnp.allclose(b_adapted, ref_b, rtol=1e-2, atol=1e-2))

    print("KERNEL_OK")
</pallas_src>

<mosaic_0001>
module attributes {stable_mosaic.version = 11 : i64} {
  func.func @_tent_kernel(%arg0: i32, %arg1: i32, %arg2: memref<4x512xf32, #tpu.memory_space<vmem>>, %arg3: memref<8x4xf32, #tpu.memory_space<vmem>>, %arg4: memref<8x1xf32, #tpu.memory_space<vmem>>, %arg5: memref<8x512xf32, #tpu.memory_space<vmem>>, %arg6: memref<8x4xf32, #tpu.memory_space<vmem>>, %arg7: memref<8x1xf32, #tpu.memory_space<vmem>>, %arg8: memref<8x4xf32, #tpu.memory_space<vmem>>, %arg9: memref<8x1xf32, #tpu.memory_space<vmem>>, %arg10: memref<8x4xf32, #tpu.memory_space<vmem>>, %arg11: memref<8x1xf32, #tpu.memory_space<vmem>>) attributes {dimension_semantics = [#tpu.dimension_semantics<arbitrary>, #tpu.dimension_semantics<arbitrary>], iteration_bounds = array<i64: 10, 1>, scalar_prefetch = 0 : i64, scratch_operands = 4 : i64, tpu.core_type = #tpu.core_type<tc>, window_params = [{transform_indices = @transform_0, window_bounds = array<i64: 4, 512>}, {pipeline_mode = #tpu.pipeline_mode<synchronous>, transform_indices = @transform_1, window_bounds = array<i64: 8, 4>}, {pipeline_mode = #tpu.pipeline_mode<synchronous>, transform_indices = @transform_2, window_bounds = array<i64: 8, 1>}, {transform_indices = @transform_3, window_bounds = array<i64: 8, 512>}, {pipeline_mode = #tpu.pipeline_mode<synchronous>, transform_indices = @transform_4, window_bounds = array<i64: 8, 4>}, {pipeline_mode = #tpu.pipeline_mode<synchronous>, transform_indices = @transform_5, window_bounds = array<i64: 8, 1>}]} {
    %c9_i32 = arith.constant 9 : i32
    %0 = arith.cmpi eq, %arg0, %c9_i32 : i32
    %c0_i32 = arith.constant 0 : i32
    %1 = arith.cmpi eq, %arg1, %c0_i32 : i32
    %c0_i32_0 = arith.constant 0 : i32
    %2 = arith.cmpi eq, %arg0, %c0_i32_0 : i32
    %c0_i32_1 = arith.constant 0 : i32
    %3 = arith.cmpi eq, %arg1, %c0_i32_1 : i32
    %4 = arith.andi %2, %3 : i1
    %5 = arith.extui %4 : i1 to i32
    %c0_i32_2 = arith.constant 0 : i32
    %6 = arith.cmpi ne, %5, %c0_i32_2 : i32
    scf.if %6 {
      %c0_25 = arith.constant 0 : index
      %c0_26 = arith.constant 0 : index
      %42 = vector.load %arg3[%c0_25, %c0_26] : memref<8x4xf32, #tpu.memory_space<vmem>>, vector<8x4xf32>
      %c0_27 = arith.constant 0 : index
      %c0_28 = arith.constant 0 : index
      %43 = vector.load %arg8[%c0_27, %c0_28] : memref<8x4xf32, #tpu.memory_space<vmem>>, vector<8x4xf32>
      tpu.vector_store %arg8[%c0_27, %c0_28], %42 {strides = array<i32>} : memref<8x4xf32, #tpu.memory_space<vmem>>, vector<8x4xf32>,
      %c0_29 = arith.constant 0 : index
      %c0_30 = arith.constant 0 : index
      %44 = vector.load %arg4[%c0_29, %c0_30] : memref<8x1xf32, #tpu.memory_space<vmem>>, vector<8x1xf32>
      %c0_31 = arith.constant 0 : index
      %c0_32 = arith.constant 0 : index
      %45 = vector.load %arg9[%c0_31, %c0_32] : memref<8x1xf32, #tpu.memory_space<vmem>>, vector<8x1xf32>
      tpu.vector_store %arg9[%c0_31, %c0_32], %44 {strides = array<i32>} : memref<8x1xf32, #tpu.memory_space<vmem>>, vector<8x1xf32>,
    } else {
    }
    %c0_i32_3 = arith.constant 0 : i32
    %7 = arith.cmpi eq, %arg1, %c0_i32_3 : i32
    %8 = arith.extui %7 : i1 to i32
    %c0_i32_4 = arith.constant 0 : i32
    %9 = arith.cmpi ne, %8, %c0_i32_4 : i32
    scf.if %9 {
      %cst_25 = arith.constant 0.000000e+00 : f32
      %42 = vector.broadcast %cst_25 : f32 to vector<8x4xf32>
      %c0_26 = arith.constant 0 : index
      %c0_27 = arith.constant 0 : index
      %43 = vector.load %arg10[%c0_26, %c0_27] : memref<8x4xf32, #tpu.memory_space<vmem>>, vector<8x4xf32>
      tpu.vector_store %arg10[%c0_26, %c0_27], %42 {strides = array<i32>} : memref<8x4xf32, #tpu.memory_space<vmem>>, vector<8x4xf32>,
      %cst_28 = arith.constant 0.000000e+00 : f32
      %44 = vector.broadcast %cst_28 : f32 to vector<8x1xf32>
      %c0_29 = arith.constant 0 : index
      %c0_30 = arith.constant 0 : index
      %45 = vector.load %arg11[%c0_29, %c0_30] : memref<8x1xf32, #tpu.memory_space<vmem>>, vector<8x1xf32>
      tpu.vector_store %arg11[%c0_29, %c0_30], %44 {strides = array<i32>} : memref<8x1xf32, #tpu.memory_space<vmem>>, vector<8x1xf32>,
    } else {
    }
    %c0 = arith.constant 0 : index
    %c0_5 = arith.constant 0 : index
    %10 = vector.load %arg2[%c0, %c0_5] : memref<4x512xf32, #tpu.memory_space<vmem>>, vector<4x512xf32>
    %c0_6 = arith.constant 0 : index
    %c0_7 = arith.constant 0 : index
    %11 = vector.load %arg8[%c0_6, %c0_7] : memref<8x4xf32, #tpu.memory_space<vmem>>, vector<8x4xf32>
    %c0_8 = arith.constant 0 : index
    %c0_9 = arith.constant 0 : index
    %12 = vector.load %arg9[%c0_8, %c0_9] : memref<8x1xf32, #tpu.memory_space<vmem>>, vector<8x1xf32>
    %cst = arith.constant dense<0.000000e+00> : vector<8x512xf32>
    %13 = tpu.matmul %11, %10, %cst {dimension_numbers = #tpu.dot_dimension_numbers<[1], [0], [0], [1], [0, 0, 1, 1], [], []>} : vector<8x4xf32>, vector<4x512xf32>, vector<8x512xf32> -> vector<8x512xf32>
    %14 = vector.broadcast %12 : vector<8x1xf32> to vector<8x512xf32>
    %15 = arith.addf %13, %14 : vector<8x512xf32>
    %16 = arith.negf %15 : vector<8x512xf32>
    %17 = math.exp %16 : vector<8x512xf32>
    %cst_10 = arith.constant 1.000000e+00 : f32
    %18 = vector.broadcast %cst_10 : f32 to vector<8x512xf32>
    %19 = arith.addf %18, %17 : vector<8x512xf32>
    %20 = arith.divf %18, %19 : vector<8x512xf32>
    %21 = arith.mulf %15, %20 : vector<8x512xf32>
    %cst_11 = arith.constant 1.000000e+00 : f32
    %22 = vector.broadcast %cst_11 : f32 to vector<8x512xf32>
    %23 = arith.subf %22, %20 : vector<8x512xf32>
    %24 = arith.mulf %21, %23 : vector<8x512xf32>
    %25 = arith.addf %20, %24 : vector<8x512xf32>
    %c0_12 = arith.constant 0 : index
    %c0_13 = arith.constant 0 : index
    %26 = vector.load %arg10[%c0_12, %c0_13] : memref<8x4xf32, #tpu.memory_space<vmem>>, vector<8x4xf32>
    %cst_14 = arith.constant dense<0.000000e+00> : vector<8x4xf32>
    %27 = tpu.matmul %25, %10, %cst_14 {dimension_numbers = #tpu.dot_dimension_numbers<[1], [1], [0], [0], [0, 0, 1, 0], [], []>} : vector<8x512xf32>, vector<4x512xf32>, vector<8x4xf32> -> vector<8x4xf32>
    %28 = arith.addf %26, %27 : vector<8x4xf32>
    %c0_15 = arith.constant 0 : index
    %c0_16 = arith.constant 0 : index
    %29 = vector.load %arg10[%c0_15, %c0_16] : memref<8x4xf32, #tpu.memory_space<vmem>>, vector<8x4xf32>
    tpu.vector_store %arg10[%c0_15, %c0_16], %28 {strides = array<i32>} : memref<8x4xf32, #tpu.memory_space<vmem>>, vector<8x4xf32>,
    %c0_17 = arith.constant 0 : index
    %c0_18 = arith.constant 0 : index
    %30 = vector.load %arg11[%c0_17, %c0_18] : memref<8x1xf32, #tpu.memory_space<vmem>>, vector<8x1xf32>
    %cst_19 = arith.constant dense<0.000000e+00> : vector<8xf32>
    %31 = vector.multi_reduction <add>, %25, %cst_19 [1] : vector<8x512xf32> to vector<8xf32>
    %32 = vector.shape_cast %31 : vector<8xf32> to vector<8x1xf32>
    %33 = arith.addf %30, %32 : vector<8x1xf32>
    %c0_20 = arith.constant 0 : index
    %c0_21 = arith.constant 0 : index
    %34 = vector.load %arg11[%c0_20, %c0_21] : memref<8x1xf32, #tpu.memory_space<vmem>>, vector<8x1xf32>
    tpu.vector_store %arg11[%c0_20, %c0_21], %33 {strides = array<i32>} : memref<8x1xf32, #tpu.memory_space<vmem>>, vector<8x1xf32>,
    %35 = arith.extui %0 : i1 to i32
    %c0_i32_22 = arith.constant 0 : i32
    %36 = arith.cmpi ne, %35, %c0_i32_22 : i32
    scf.if %36 {
      %c0_25 = arith.constant 0 : index
      %c0_26 = arith.constant 0 : index
      %42 = vector.load %arg5[%c0_25, %c0_26] : memref<8x512xf32, #tpu.memory_space<vmem>>, vector<8x512xf32>
      tpu.vector_store %arg5[%c0_25, %c0_26], %15 {strides = array<i32>} : memref<8x512xf32, #tpu.memory_space<vmem>>, vector<8x512xf32>,
    } else {
    }
    %37 = arith.extui %1 : i1 to i32
    %c0_i32_23 = arith.constant 0 : i32
    %38 = arith.cmpi ne, %37, %c0_i32_23 : i32
    scf.if %38 {
      %c0_25 = arith.constant 0 : index
      %c0_26 = arith.constant 0 : index
      %42 = vector.load %arg8[%c0_25, %c0_26] : memref<8x4xf32, #tpu.memory_space<vmem>>, vector<8x4xf32>
      %c0_27 = arith.constant 0 : index
      %c0_28 = arith.constant 0 : index
      %43 = vector.load %arg10[%c0_27, %c0_28] : memref<8x4xf32, #tpu.memory_space<vmem>>, vector<8x4xf32>
      %cst_29 = arith.constant 2.44140637E-7 : f32
      %44 = vector.broadcast %cst_29 : f32 to vector<8x4xf32>
      %45 = arith.mulf %44, %43 : vector<8x4xf32>
      %46 = arith.subf %42, %45 : vector<8x4xf32>
      %c0_30 = arith.constant 0 : index
      %c0_31 = arith.constant 0 : index
      %47 = vector.load %arg8[%c0_30, %c0_31] : memref<8x4xf32, #tpu.memory_space<vmem>>, vector<8x4xf32>
      tpu.vector_store %arg8[%c0_30, %c0_31], %46 {strides = array<i32>} : memref<8x4xf32, #tpu.memory_space<vmem>>, vector<8x4xf32>,
      %c0_32 = arith.constant 0 : index
      %c0_33 = arith.constant 0 : index
      %48 = vector.load %arg9[%c0_32, %c0_33] : memref<8x1xf32, #tpu.memory_space<vmem>>, vector<8x1xf32>
      %c0_34 = arith.constant 0 : index
      %c0_35 = arith.constant 0 : index
      %49 = vector.load %arg11[%c0_34, %c0_35] : memref<8x1xf32, #tpu.memory_space<vmem>>, vector<8x1xf32>
      %cst_36 = arith.constant 2.44140637E-7 : f32
      %50 = vector.broadcast %cst_36 : f32 to vector<8x1xf32>
      %51 = arith.mulf %50, %49 : vector<8x1xf32>
      %52 = arith.subf %48, %51 : vector<8x1xf32>
      %c0_37 = arith.constant 0 : index
      %c0_38 = arith.constant 0 : index
      %53 = vector.load %arg9[%c0_37, %c0_38] : memref<8x1xf32, #tpu.memory_space<vmem>>, vector<8x1xf32>
      tpu.vector_store %arg9[%c0_37, %c0_38], %52 {strides = array<i32>} : memref<8x1xf32, #tpu.memory_space<vmem>>, vector<8x1xf32>,
    } else {
    }
    %39 = arith.andi %0, %1 : i1
    %40 = arith.extui %39 : i1 to i32
    %c0_i32_24 = arith.constant 0 : i32
    %41 = arith.cmpi ne, %40, %c0_i32_24 : i32
    scf.if %41 {
      %c0_25 = arith.constant 0 : index
      %c0_26 = arith.constant 0 : index
      %42 = vector.load %arg8[%c0_25, %c0_26] : memref<8x4xf32, #tpu.memory_space<vmem>>, vector<8x4xf32>
      %c0_27 = arith.constant 0 : index
      %c0_28 = arith.constant 0 : index
      %43 = vector.load %arg6[%c0_27, %c0_28] : memref<8x4xf32, #tpu.memory_space<vmem>>, vector<8x4xf32>
      tpu.vector_store %arg6[%c0_27, %c0_28], %42 {strides = array<i32>} : memref<8x4xf32, #tpu.memory_space<vmem>>, vector<8x4xf32>,
      %c0_29 = arith.constant 0 : index
      %c0_30 = arith.constant 0 : index
      %44 = vector.load %arg9[%c0_29, %c0_30] : memref<8x1xf32, #tpu.memory_space<vmem>>, vector<8x1xf32>
      %c0_31 = arith.constant 0 : index
      %c0_32 = arith.constant 0 : index
      %45 = vector.load %arg7[%c0_31, %c0_32] : memref<8x1xf32, #tpu.memory_space<vmem>>, vector<8x1xf32>
      tpu.vector_store %arg7[%c0_31, %c0_32], %44 {strides = array<i32>} : memref<8x1xf32, #tpu.memory_space<vmem>>, vector<8x1xf32>,
    } else {
    }
    return
  }
  func.func @transform_0(%arg0: i32, %arg1: i32) -> (i32, i32) {
    %c0_i32 = arith.constant 0 : i32
    %c0_i32_0 = arith.constant 0 : i32
    return %c0_i32, %arg1 : i32, i32
  }
  func.func @transform_1(%arg0: i32, %arg1: i32) -> (i32, i32) {
    %c0_i32 = arith.constant 0 : i32
    %c0_i32_0 = arith.constant 0 : i32
    %c0_i32_1 = arith.constant 0 : i32
    return %c0_i32, %c0_i32_0 : i32, i32
  }
  func.func @transform_2(%arg0: i32, %arg1: i32) -> (i32, i32) {
    %c0_i32 = arith.constant 0 : i32
    %c0_i32_0 = arith.constant 0 : i32
    %c0_i32_1 = arith.constant 0 : i32
    return %c0_i32, %c0_i32_0 : i32, i32
  }
  func.func @transform_3(%arg0: i32, %arg1: i32) -> (i32, i32) {
    %c0_i32 = arith.constant 0 : i32
    %c0_i32_0 = arith.constant 0 : i32
    return %c0_i32, %arg1 : i32, i32
  }
  func.func @transform_4(%arg0: i32, %arg1: i32) -> (i32, i32) {
    %c0_i32 = arith.constant 0 : i32
    %c0_i32_0 = arith.constant 0 : i32
    %c0_i32_1 = arith.constant 0 : i32
    return %c0_i32, %c0_i32_0 : i32, i32
  }
  func.func @transform_5(%arg0: i32, %arg1: i32) -> (i32, i32) {
    %c0_i32 = arith.constant 0 : i32
    %c0_i32_0 = arith.constant 0 : i32
    %c0_i32_1 = arith.constant 0 : i32
    return %c0_i32, %c0_i32_0 : i32, i32
  }
}

</mosaic_0001>

<bundles_post_ra>
// kernel: tpu_custom_call.1
= control target key start
LH: loop header
LB: loop body
LE: loop exit
PB: predicated region body
PF: predicated region fallthrough
CT: control target
= control target key end

     0   :  { %11 = vsyncpa [#allocation7], 0  ;;  %s871_s18 = smov 0   ;;  %s873_s19 = smov 0   ;;  %s970_s0 = inlined_call_operand.vmem [shape: f32[4,512], index: 0, kind: input, shape index: {}]   ;;  %s971_s1 = inlined_call_operand.vmem [shape: f32[8,4], index: 1, kind: input, shape index: {}]   ;;  %s972_s2 = inlined_call_operand.vmem [shape: f32[8,1], index: 2, kind: input, shape index: {}]   ;;  %s973_s3 = inlined_call_operand.hbm [shape: f32[8,512], index: 3, kind: output, shape index: {0}]   ;;  %s974_s4 = inlined_call_operand.vmem [shape: f32[8,4], index: 4, kind: output, shape index: {1}]   ;;  %s975_s5 = inlined_call_operand.vmem [shape: f32[8,1], index: 5, kind: output, shape index: {2}]  }
   0x1   :  { %s875_s20 = smov 0  }
   0x2 LB: > { %s711_s21 = sadd.s32 4294967295, %s836_s20   ;;  %s29_s22 = sadd.s32 1, %s832_s19  ;;  %s836_s20 = sphi %s875_s20, %s17_s20   ;;  %s832_s19 = sphi %s873_s19, %s978_s19   ;;  %s828_s18 = sphi %s871_s18, %s977_s18  }
   0x3   : > { %p31_p0 = scmp.ge.s32.totalorder %s29_s22, 10  ;;  %p714_p1 = scmp.ge.s32.totalorder %s836_s20, 1 }
   0x4   : > { %p196_p2 = scmp.lt.s32.totalorder %s836_s20, 11 }
   0x5   : > { %s980_s22 = smov (%p31_p0, %s29_s22), 0 }
   0x6   : > { %p197_p3 = pnand %p714_p1, %p196_p2 }
   0x7   : > { %p226_p4 = scmp.eq.s32.totalorder (!%p197_p3), %s828_s18, 9  ;;  %p228_p5 = scmp.eq.s32.totalorder (!%p197_p3), %s828_s18, 0 }
   0x8   : > { %200 = sbr.rel (%p197_p3) target bundleno = 495 (0x1ef), region = 32 }
   0xd   : > { %232 = sbr.rel (!%p228_p5) target bundleno = 18 (0x12), region = 36  ;;  %v233_v0 = vld [vmem:[%s971_s1] sm:$0xff] (%p228_p5)  ;;  %vm234_vm0 = vcmask (%p228_p5), 31744   ;;  %vm237_vm1 = vcmask (%p228_p5), 7168  }
   0xe   : > { %v236_v1 = vld [vmem:[%s972_s2] sm:$0xff] (%p228_p5)  ;;  %235 = vst.msk [vmem:[#allocation2] sm:$0xff] (%p228_p5), %vm234_vm0, %v233_v0 }
   0xf   : > { %238 = vst.msk [vmem:[#allocation3] sm:$0xff] (%p228_p5), %vm237_vm1, %v236_v1 }
  0x12 PF: > { %v246_v2 = vld [vmem:[%s970_s0] sm:$0xff]  ;;  %vm263_vm2 = vcmask 1043456   ;;  %v247_v3 = vld [vmem:[%s970_s0 + $0x8] sm:$0xff]  ;;  %vm244_vm3 = vcmask 7168   ;;  %vm242_vm4 = vcmask 31744   ;;  %v838_v6 = vmov 0.0  }
  0x13   : > { %v257_v4 = vcombine.high %v246_v2, %v246_v2  ;;  %v258_v5 = vcombine.high %v247_v3, %v247_v3  ;;  %245 = vst.msk [vmem:[#allocation5] sm:$0xff] %vm244_vm3, %v838_v6  ;;  %336 = vmatprep.mubr.f32.mxu0 %v838_v6  ;;  %407 = vmatprep.mubr.f32.mxu1 %v838_v6  ;;  %v839_v8 = vmov 0   ;;  %p726_p6 = scmp.ne.s32.totalorder %s828_s18, 9 }
  0x14   : > { %243 = vst.msk [vmem:[#allocation4] sm:$0xff] %vm242_vm4, %v838_v6  ;;  %767 = vset.pattern.permute.xlu0 %v839_v8 }
  0x15   : > { %v248_v7 = vld [vmem:[#allocation2] sm:$0xff]  ;;  %716 = vmatprep.subr.msk.mxu0 %vm263_vm2, %v257_v4  ;;  %719 = vmatprep.subr.msk.mxu1 %vm263_vm2, %v258_v5 }
  0x16   : > { %v249_v9 = vld [vmem:[#allocation3] sm:$0xff]  ;;  %717 = vmatpush1.msk.msra.mxu0 %vm263_vm2, %v246_v2  ;;  %720 = vmatpush1.msk.msra.mxu1 %vm263_vm2, %v247_v3 }
  0x17   : > { %718 = vmatmul.mubr.msk.f32.vlgmr.msra.gmra.mxu0 %vm242_vm4, %v248_v7  ;;  %721 = vmatmul.mubr.msk.f32.vlgmr.msra.gmra.mxu1 %vm242_vm4, %v248_v7 }
  0x18   : > { %252 = vperm.xlu0 %767, %v249_v9   ;;  %487 = vmatprep.subr.mxu0 %v257_v4 }
  0x19   : > { %557 = vmatprep.subr.mxu1 %v258_v5  ;;  %488 = vmatpush1.xpose.msra.mxu0 %v246_v2 }
  0x1a   : > { %558 = vmatpush1.xpose.msra.mxu1 %v247_v3  ;;  %v599_v54 = vld [vmem:[#allocation5] sm:$0xff] }
  0x1b   : > { %v454_v58 = vld [vmem:[#allocation4] sm:$0xff] }
  0x93   : > { %v253_v10 = vpop.permute.xlu0 %252 }
  0xd7   : > { %v338_v11 = vpop.f32.mrf.mxu0  ;;  %v409_v12 = vpop.f32.mrf.mxu1 }
  0xd8   : > { %v914_v13 = vadd.f32 %v338_v11, %v253_v10  ;;  %v916_v14 = vadd.f32 %v409_v12, %v253_v10 }
  0xd9   : > { %v340_v15 = vpop.f32.mrf.mxu0  ;;  %v411_v16 = vpop.f32.mrf.mxu1 }
  0xda   : > { %v722_v17 = vmul.f32 -1.442695, %v914_v13  ;;  %v724_v18 = vmul.f32 -1.442695, %v916_v14  ;;  %v341_v19 = vadd.f32 %v340_v15, %v253_v10  ;;  %v920_v20 = vadd.f32 %v411_v16, %v253_v10 }
  0xdc   : > { %770 = vpow2.f32 %v722_v17  ;;  %v723_v21 = vmul.f32 -1.442695, %v341_v19  ;;  %v725_v22 = vmul.f32 -1.442695, %v920_v20 }
  0xdd   : > { %772 = vpow2.f32 %v724_v18 }
  0xde   : > { %774 = vpow2.f32 %v723_v21 }
  0xdf   : > { %776 = vpow2.f32 %v725_v22 }
  0xe9   : > { %v771_v23 = vpop.eup %770 }
  0xea   : > { %v773_v24 = vpop.eup %772  ;;  %v426_v25 = vadd.f32 1.0, %v771_v23 }
  0xeb   : > { %v775_v26 = vpop.eup %774  ;;  %v428_v27 = vadd.f32 1.0, %v773_v24 }
  0xec   : > { %v777_v28 = vpop.eup %776  ;;  %778 = vrcp.f32 %v426_v25  ;;  %v427_v29 = vadd.f32 1.0, %v775_v26 }
  0xed   : > { %780 = vrcp.f32 %v428_v27  ;;  %v429_v30 = vadd.f32 1.0, %v777_v28 }
  0xee   : > { %782 = vrcp.f32 %v427_v29 }
  0xef   : > { %784 = vrcp.f32 %v429_v30 }
  0xf9   : > { %v779_v31 = vpop.eup %778 }
  0xfa   : > { %v781_v32 = vpop.eup %780  ;;  %v438_v33 = vmul.f32 %v779_v31, %v914_v13  ;;  %v442_v34 = vsub.f32 1.0, %v779_v31 }
  0xfb   : > { %v783_v35 = vpop.eup %782  ;;  %v440_v36 = vmul.f32 %v781_v32, %v916_v14  ;;  %v444_v37 = vsub.f32 1.0, %v781_v32 }
  0xfc   : > { %v785_v38 = vpop.eup %784  ;;  %v446_v39 = vmul.f32 %v442_v34, %v438_v33  ;;  %v439_v40 = vmul.f32 %v783_v35, %v341_v19  ;;  %v443_v41 = vsub.f32 1.0, %v783_v35 }
  0xfd   : > { %v441_v42 = vmul.f32 %v785_v38, %v920_v20  ;;  %v445_v43 = vsub.f32 1.0, %v785_v38  ;;  %v448_v44 = vmul.f32 %v444_v37, %v440_v36 }
  0xfe   : > { %v447_v45 = vmul.f32 %v443_v41, %v439_v40  ;;  %v450_v47 = vadd.f32 %v779_v31, %v446_v39 }
  0xff   : > { %v449_v46 = vmul.f32 %v445_v43, %v441_v42  ;;  %v452_v50 = vadd.f32 %v781_v32, %v448_v44 }
 0x100   : > { %v451_v48 = vadd.f32 %v783_v35, %v447_v45 }
 0x101   : > { %v453_v49 = vadd.f32 %v785_v38, %v449_v46 }
 0x102   : > { %521 = vmatprep.mubr.f32.mxu0 %v451_v48  ;;  %v600_v51 = vadd.f32 %v451_v48, %v450_v47 }
 0x103   : > { %591 = vmatprep.mubr.f32.mxu1 %v453_v49  ;;  %522 = vmatmul.mubr.f32.vlgmr.msra.gmra.mxu0 %v450_v47 }
 0x104   : > { %592 = vmatmul.mubr.f32.vlgmr.msra.gmra.mxu1 %v452_v50  ;;  %v601_v52 = vadd.f32 %v600_v51, %v452_v50 }
 0x106   : > { %v602_v53 = vadd.f32 %v601_v52, %v453_v49 }
 0x108   : > { %603 = vadd.xlane.f32.xlu0 %v602_v53 }
 0x191   : > { %v604_v55 = vpop.xlane.xlu0 %603 }
 0x192   : > { %v605_v56 = vadd.f32 %v604_v55, %v599_v54 }
 0x194   : > { %607 = vst.msk [vmem:[#allocation5] sm:$0xff] %vm244_vm3, %v605_v56 }
 0x1c3   : > { %v523_v57 = vpop.f32.mrf.mxu0 }
 0x1c4   : > { %v593_v59 = vpop.f32.mrf.mxu1 }
 0x1c5   : > { %v594_v60 = vadd.f32 %v593_v59, %v523_v57  ;;  %v525_v61 = vpop.f32.mrf.mxu0  ;;  %610 = sbr.rel (%p726_p6) target bundleno = 460 (0x1cc), region = 44 }
 0x1c6   : > { %v595_v62 = vpop.f32.mrf.mxu1 }
 0x1c7   : > { %v597_v63 = vadd.f32 %v594_v60, %v454_v58 }
 0x1c9   : > { %598 = vst.msk [vmem:[#allocation4] sm:$0xff] %vm242_vm4, %v597_v63 }
 0x1ca   : > { %611 = vst [vmem:[#allocation6] sm:$0xff] %v914_v13  ;;  %612 = vst [vmem:[#allocation6 + $0x8] sm:$0xff] %v341_v19 }
 0x1cb   : > { %613 = vst [vmem:[#allocation6 + $0x10] sm:$0xff] %v916_v14  ;;  %614 = vst [vmem:[#allocation6 + $0x18] sm:$0xff] %v920_v20 }
 0x1cc PF: > { %v618_v0 = vld [vmem:[#allocation2] sm:$0xff]  ;;  %v623_v3 = vld [vmem:[#allocation3] sm:$0xff]  ;;  %v624_v4 = vld [vmem:[#allocation5] sm:$0xff] }
 0x1cd   : > { %v625_v5 = vmul.f32 2.4414064e-07, %v624_v4 }
 0x1cf   : > { %v626_v7 = vsub.f32 %v623_v3, %v625_v5 }
 0x1d1   : > { %627 = vst.msk [vmem:[#allocation3] sm:$0xff] %vm244_vm3, %v626_v7 }
 0x1d2   : > { %v619_v1 = vld [vmem:[#allocation4] sm:$0xff] }
 0x1d3   : > { %v620_v2 = vmul.f32 2.4414064e-07, %v619_v1  ;;  %631 = sbr.rel (!%p226_p4) target bundleno = 480 (0x1e0), region = 52 }
 0x1d5   : > { %v621_v6 = vsub.f32 %v618_v0, %v620_v2 }
 0x1d7   : > { %622 = vst.msk [vmem:[#allocation2] sm:$0xff] %vm242_vm4, %v621_v6 }
 0x1d8   : > { %v634_v9 = vld [vmem:[#allocation3] sm:$0xff] }
 0x1d9   : > { %635 = vst.msk [vmem:[%s975_s5] sm:$0xff] %vm244_vm3, %v634_v9 }
 0x1de   : > { %v632_v8 = vld [vmem:[#allocation2] sm:$0xff] }
 0x1df   : > { %633 = vst.msk [vmem:[%s974_s4] sm:$0xff] %vm242_vm4, %v632_v8 }
 0x1e0 PF: > { %p946_p7 = scmp.eq.s32.totalorder %s711_s21, 9  ;;  %s840_s11 = smov [#allocation6]  }
 0x1e1   : > { %s646_s12 = sshll.u32 %s840_s11, 4  ;;  %s647_s12 = int_to_ptr.vmem [resolvable:$true] %s646_s12 }
 0x1e2   : > { %s786_s13 = scalar_lea.vmem %s647_s12, 512  ;;  %p793_p11 = scmp.lt.s32.totalorder %s647_s12, %s647_s12 }
 0x1e3   : > { %p787_p8 = scmp.ne.s32.totalorder %s647_s12, %s786_s13  ;;  %p794_p12 = scmp.lt.s32.totalorder %s786_s13, %s786_s13 }
 0x1e5   : > { %p788_p9 = pnand %p787_p8, %p946_p7  ;;  %p795_p13 = por %p794_p12, %p793_p11 }
 0x1e7   : > { %p789_p10 = pneg %p788_p9 }
 0x1e9   : > { %p796_p0 = pnand %p795_p13, %p789_p10 }
 0x1eb   : > { %799 = shalt.err (!%p796_p0)
}
 0x1ec   : > { %735 = dma.vmem_to_hbm [thread:$0]  (%p946_p7), %s647_s12, 512, %s973_s3, [#allocation7]  }
 0x1ed   : > { %823 = dma.done.wait (%p946_p7), [#allocation7], 512  }
 0x1ee   : > { %825 = vsyncadd (%p946_p7), [#allocation7], 4294966784 }
 0x1ef PF: > { %s17_s20 = sadd.s32 1, %s836_s20   ;;  %s977_s18 = smov %s832_s19 }
 0x1f0   : > { %p14_p1 = scmp.ge.s32.totalorder %s17_s20, 12   ;;  %s978_s19 = smov %s980_s22 }
 0x1f2   :  { %16 = sbr.rel (!%p14_p1) target bundleno = 2 (0x2), region = 96 }
 0x1f7   :  { %671 = vsyncpa [#allocation7], 1 }
 0x1f8   :  { %673 = vsyncpa [#allocation7 + $0x1], 1 }

</bundles_post_ra>
